<compile_context>
chip_gen: v7x
topology: tpu7x:2x2x1
jax: 0.10.0
libtpu: 0.0.40
codegen_flags: <defaults>
</compile_context>

<pallas_src>
import functools
from typing import NamedTuple

import jax
import jax.numpy as jnp
import numpy as np
from jax.experimental import pallas as pl
from jax.experimental.pallas import tpu as pltpu

_SELU_ALPHA = 1.6732632423543772848170429916717
_SELU_SCALE = 1.0507009873554804934193349852946
_LANE = 128
_SUBLANE = 8
_MXU_ROWS = 256


def _round_up(x, m):
    return (x + m - 1) // m * m


def _vmem_budget_bytes():
    """~80% of this generation's per-core VMEM (v5e/v6e: 128 MiB, v7x: 64 MiB)."""
    cap = None
    try:
        cap = getattr(pltpu.get_tpu_info(), "vmem_capacity_bytes", None)
    except Exception:
        cap = None
    if not cap or cap <= 0:
        cap = 64 * 1024 * 1024  # conservative default: v7x per-TC size
    return int(0.8 * cap)


def _choose_tm(M, block_rows):
    """Row tile: target >= 2 (ideally even) grid steps so v7x megacore uses both TCs."""
    m8 = _round_up(max(M, 1), _SUBLANE)
    n = max(2, -(-m8 // block_rows))
    if n % 2:
        n += 1
    tm = _round_up(-(-m8 // n), _SUBLANE)
    if tm >= _MXU_ROWS:
        tm = (tm // _MXU_ROWS) * _MXU_ROWS  # fill the 256x256 MXU per pass
    return max(tm, _SUBLANE)


class PreparedMLPParams(NamedTuple):
    """Pre-transposed, lane-padded, pre-cast weights (build once, reuse per call)."""
    w1_t: jax.Array   # (Din_p, H_p)  compute dtype
    b1_p: jax.Array   # (1, H_p)      float32
    w2_t: jax.Array   # (H_p, Dout_p) compute dtype
    b2_p: jax.Array   # (1, Dout_p)   float32
    din: int
    hidden: int
    dout: int


def prepare_mlp_params(params, compute_dtype=jnp.bfloat16):
    """One-time layout prep: transpose torch (out,in) weights to (in,out), zero-pad
    every feature dim to a multiple of 128, cast matmul operands to compute_dtype."""
    W1, b1, W2, b2 = params
    H, Din = W1.shape
    Dout = W2.shape[0]
    din_p, h_p, dout_p = (_round_up(d, _LANE) for d in (Din, H, Dout))
    w1_t = jnp.zeros((din_p, h_p), compute_dtype).at[:Din, :H].set(
        W1.T.astype(compute_dtype))
    b1_p = jnp.zeros((1, h_p), jnp.float32).at[0, :H].set(b1.astype(jnp.float32))
    w2_t = jnp.zeros((h_p, dout_p), compute_dtype).at[:H, :Dout].set(
        W2.T.astype(compute_dtype))
    b2_p = jnp.zeros((1, dout_p), jnp.float32).at[0, :Dout].set(b2.astype(jnp.float32))
    return PreparedMLPParams(w1_t, b1_p, w2_t, b2_p, Din, H, Dout)


def _activation(h, use_selu, negative_slope):
    if use_selu:
        # NOTE: expm1 runs on the single EUP port; once matmuls are bf16 and
        # Din+Dout is small, the EUP slot (not the MXU) is the binding unit.
        return _SELU_SCALE * jnp.where(h > 0, h, _SELU_ALPHA * jnp.expm1(h))
    return jnp.where(h > 0, h, negative_slope * h)   # F.leaky_relu default slope


def _mlp_kernel_resident(use_selu, negative_slope,
                         x_ref, w1_ref, b1_ref, w2_ref, b2_ref, o_ref):
    # fc1: (TM, Din_p) @ (Din_p, H_p) + (1, H_p) -> f32 accumulation on the MXU.
    h = jnp.dot(x_ref[...], w1_ref[...],
                preferred_element_type=jnp.float32) + b1_ref[...]
    h = _activation(h, use_selu, negative_slope)
    # dropout == identity in eval mode.
    # TODO(synk): training-mode dropout not implemented.
    out = jnp.dot(h.astype(w2_ref.dtype), w2_ref[...],
                  preferred_element_type=jnp.float32) + b2_ref[...]
    o_ref[...] = out.astype(o_ref.dtype)           # lane-dense store (Dout_p % 128 == 0)


def _mlp_kernel_htiled(use_selu, negative_slope,
                       x_ref, w1_ref, b1_ref, w2_ref, b2_ref, o_ref, acc_ref):
    # Hidden dim tiled across the (last, "arbitrary") grid axis; f32 accumulator
    # in VMEM scratch, init at h==0, bias-add + store at h==last.
    hi = pl.program_id(1)

    @pl.when(hi == 0)
    def _():
        acc_ref[...] = jnp.zeros_like(acc_ref)

    h = jnp.dot(x_ref[...], w1_ref[...],
                preferred_element_type=jnp.float32) + b1_ref[...]
    h = _activation(h, use_selu, negative_slope)
    # dropout == identity in eval mode.
    acc_ref[...] += jnp.dot(h.astype(w2_ref.dtype), w2_ref[...],
                            preferred_element_type=jnp.float32)

    @pl.when(hi == pl.num_programs(1) - 1)
    def _():
        o_ref[...] = (acc_ref[...] + b2_ref[...]).astype(o_ref.dtype)


def mlp_forward(x, params, *, use_selu=False, negative_slope=0.01,
                block_rows=512, compute_dtype=jnp.bfloat16,
                force_h_tiling=False, hidden_block=None):
    """Pallas implementation of MLP.forward (eval mode).

    params: either a raw torch-layout tuple (W1 (H,Din), b1 (H,), W2 (Dout,H),
    b2 (Dout,)) or a PreparedMLPParams from prepare_mlp_params() (preferred for
    repeated inference). x may have arbitrary leading dims; features last.
    """
    prep = (params if isinstance(params, PreparedMLPParams)
            else prepare_mlp_params(params, compute_dtype))
    compute_dtype = prep.w1_t.dtype
    Din, H, Dout = prep.din, prep.hidden, prep.dout
    din_p, h_p = prep.w1_t.shape
    dout_p = prep.w2_t.shape[1]

    lead_shape = x.shape[:-1]
    assert x.shape[-1] == Din, "feature dim mismatch"
    M = int(np.prod(lead_shape)) if lead_shape else 1

    out_dtype = x.dtype
    esz = jnp.dtype(compute_dtype).itemsize
    out_esz = jnp.dtype(out_dtype).itemsize

    TM = _choose_tm(M, block_rows)
    M_p = _round_up(M, TM)
    n_rows = M_p // TM

    # Pad / cast x only when needed; aligned inputs stream straight from HBM.
    x2d = x.reshape(M, Din)
    if M_p == M and din_p == Din:
        x_in = x2d if x2d.dtype == compute_dtype else x2d.astype(compute_dtype)
    else:
        x_in = jnp.zeros((M_p, din_p), compute_dtype).at[:M, :Din].set(
            x2d.astype(compute_dtype))

    budget = _vmem_budget_bytes()
    weight_bytes_single = (din_p * h_p + h_p * dout_p) * esz + (h_p + dout_p) * 4
    resident_bytes = (
        2 * TM * din_p * esz           # streamed x tile (double-buffered)
        + 2 * TM * dout_p * out_esz    # streamed out tile (double-buffered)
        + weight_bytes_single          # resident weights/biases (single-buffered)
        + 2 * TM * h_p * 4             # f32 activation headroom
    )

    cost = pl.CostEstimate(
        flops=2 * M_p * din_p * h_p + 2 * M_p * h_p * dout_p,
        transcendentals=(M_p * h_p if use_selu else 0),
        bytes_accessed=(M_p * din_p * esz
                        + (din_p * h_p + h_p * dout_p) * esz
                        + (h_p + dout_p) * 4
                        + M_p * dout_p * out_esz),
    )
    out_shape = jax.ShapeDtypeStruct((M_p, dout_p), out_dtype)

    use_htiled = force_h_tiling or resident_bytes > budget

    if not use_htiled:
        kernel = functools.partial(_mlp_kernel_resident, use_selu, negative_slope)

        def run(single_buffer_weights):
            if single_buffer_weights:
                # Constant index_map => nothing to pipeline; keep one buffer.
                def w_spec(shape, imap):
                    return pl.BlockSpec(shape, imap, pipeline_mode=pl.Buffered(1))
                wbytes = weight_bytes_single
            else:
                w_spec = pl.BlockSpec
                wbytes = 2 * weight_bytes_single
            step_bytes = resident_bytes - weight_bytes_single + wbytes
            vmem_limit = int(min(max(step_bytes + (4 << 20), 16 << 20), budget))
            return pl.pallas_call(
                kernel,
                out_shape=out_shape,
                grid=(n_rows,),
                in_specs=[
                    pl.BlockSpec((TM, din_p), lambda i: (i, 0)),   # streamed x tile
                    w_spec((din_p, h_p), lambda i: (0, 0)),        # resident W1
                    w_spec((1, h_p), lambda i: (0, 0)),            # resident b1
                    w_spec((h_p, dout_p), lambda i: (0, 0)),       # resident W2
                    w_spec((1, dout_p), lambda i: (0, 0)),         # resident b2
                ],
                out_specs=pl.BlockSpec((TM, dout_p), lambda i: (i, 0)),
                compiler_params=pltpu.CompilerParams(
                    dimension_semantics=("parallel",),
                    vmem_limit_bytes=vmem_limit),
                cost_estimate=cost,
            )(x_in, prep.w1_t, prep.b1_p, prep.w2_t, prep.b2_p)

        try:
            out_p = run(True)    # single-buffered resident weights
        except Exception:
            out_p = run(False)   # fallback: default double-buffering
    else:
        # ---- H-tiled path: bound per-step footprint without shrinking TM ----
        fixed = (2 * TM * din_p * esz + 2 * TM * dout_p * out_esz
                 + 2 * dout_p * 4 + TM * dout_p * 4)
        per_th = 2 * (din_p + dout_p) * esz + 2 * 4 + 2 * TM * 4
        TH = None
        if hidden_block is not None:
            cand = _round_up(min(hidden_block, h_p), _LANE)
            if h_p % cand == 0:
                TH = cand
        if TH is None:
            n_lane_blocks = h_p // _LANE
            for n_h in range(1, n_lane_blocks + 1):
                if n_lane_blocks % n_h:
                    continue
                cand = h_p // n_h
                if fixed + per_th * cand <= budget:
                    TH = cand
                    break
            else:
                TH = _LANE
        n_h = h_p // TH
        vmem_limit = int(min(max(fixed + per_th * TH + (4 << 20), 16 << 20), budget))

        kernel = functools.partial(_mlp_kernel_htiled, use_selu, negative_slope)
        out_p = pl.pallas_call(
            kernel,
            out_shape=out_shape,
            grid=(n_rows, n_h),                                   # reduction axis last
            in_specs=[
                pl.BlockSpec((TM, din_p), lambda i, h: (i, 0)),   # x tile
                pl.BlockSpec((din_p, TH), lambda i, h: (0, h)),   # W1 column block
                pl.BlockSpec((1, TH), lambda i, h: (0, h)),       # b1 block
                pl.BlockSpec((TH, dout_p), lambda i, h: (h, 0)),  # W2 row block
                pl.BlockSpec((1, dout_p), lambda i, h: (0, 0)),   # b2
            ],
            out_specs=pl.BlockSpec((TM, dout_p), lambda i, h: (i, 0)),
            scratch_shapes=[pltpu.VMEM((TM, dout_p), jnp.float32)],
            compiler_params=pltpu.CompilerParams(
                dimension_semantics=("parallel", "arbitrary"),
                vmem_limit_bytes=vmem_limit),
            cost_estimate=cost,
        )(x_in, prep.w1_t, prep.b1_p, prep.w2_t, prep.b2_p)

    out = out_p
    if M_p != M or dout_p != Dout:
        out = out[:M, :Dout]
    return out.reshape(*lead_shape, Dout)


def _reference(x, params, use_selu=False, negative_slope=0.01):
    """Pure-JAX reference mirroring the PyTorch forward (eval mode)."""
    W1, b1, W2, b2 = params
    h = x @ W1.T + b1
    h = jax.nn.selu(h) if use_selu else jax.nn.leaky_relu(h, negative_slope)
    return h @ W2.T + b2


def _init_linear(key, out_f, in_f):
    """Deterministic torch-style uniform(-1/sqrt(in), 1/sqrt(in)) init."""
    k1, k2 = jax.random.split(key)
    bound = 1.0 / np.sqrt(in_f)
    W = jax.random.uniform(k1, (out_f, in_f), jnp.float32, -bound, bound)
    b = jax.random.uniform(k2, (out_f,), jnp.float32, -bound, bound)
    return W, b


if __name__ == "__main__":
    # Small shapes consistent with the module: batch=2, seq=8, hidden=32.
    batch, seq = 2, 8
    input_size, hidden_size, output_size = 16, 32, 4

    key = jax.random.PRNGKey(0)
    k_x, k_p1, k_p2, k_p3 = jax.random.split(key, 4)

    x = jax.random.normal(k_x, (batch, seq, input_size), jnp.float32)
    W1, b1 = _init_linear(k_p1, hidden_size, input_size)
    W2, b2 = _init_linear(k_p2, output_size, hidden_size)
    params = (W1, b1, W2, b2)

    for use_selu in (False, True):
        ref = _reference(x, params, use_selu=use_selu)

        # f32 compute path: tight tolerance (padding is exact).
        out_f32 = mlp_forward(x, params, use_selu=use_selu,
                              compute_dtype=jnp.float32)
        jax.block_until_ready(out_f32)
        np.testing.assert_allclose(np.asarray(out_f32), np.asarray(ref),
                                   rtol=1e-4, atol=1e-4)

        # Default bf16 MXU path with one-time prepared (hoisted) weights.
        prep = prepare_mlp_params(params, compute_dtype=jnp.bfloat16)
        out_bf16 = mlp_forward(x, prep, use_selu=use_selu)
        jax.block_until_ready(out_bf16)
        np.testing.assert_allclose(np.asarray(out_bf16), np.asarray(ref),
                                   rtol=2e-2, atol=5e-2)

    # Exercise the H-tiled accumulator path (wider hidden layer, forced tiling).
    hidden_big = 256
    W1b, b1b = _init_linear(k_p3, hidden_big, input_size)
    W2b, b2b = _init_linear(k_p2, output_size, hidden_big)
    params_big = (W1b, b1b, W2b, b2b)
    ref_big = _reference(x, params_big, use_selu=True)
    out_big = mlp_forward(x, params_big, use_selu=True,
                          compute_dtype=jnp.float32,
                          force_h_tiling=True, hidden_block=128)
    jax.block_until_ready(out_big)
    np.testing.assert_allclose(np.asarray(out_big), np.asarray(ref_big),
                               rtol=1e-4, atol=1e-4)

    print("KERNEL_OK")
</pallas_src>

<mosaic_0001>
module attributes {stable_mosaic.version = 11 : i64} {
  func.func @_mlp_kernel_resident(%arg0: i32, %arg1: memref<8x128xf32, #tpu.memory_space<vmem>>, %arg2: memref<128x128xf32, #tpu.memory_space<vmem>>, %arg3: memref<1x128xf32, #tpu.memory_space<vmem>>, %arg4: memref<128x128xf32, #tpu.memory_space<vmem>>, %arg5: memref<1x128xf32, #tpu.memory_space<vmem>>, %arg6: memref<8x128xf32, #tpu.memory_space<vmem>>) attributes {dimension_semantics = [#tpu.dimension_semantics<parallel>], iteration_bounds = array<i64: 2>, scalar_prefetch = 0 : i64, scratch_operands = 0 : i64, tpu.core_type = #tpu.core_type<tc>, window_params = [{transform_indices = @transform_0, window_bounds = array<i64: 8, 128>}, {pipeline_mode = #tpu.pipeline_mode<synchronous>, transform_indices = @transform_1, window_bounds = array<i64: 128, 128>}, {pipeline_mode = #tpu.pipeline_mode<synchronous>, transform_indices = @transform_2, window_bounds = array<i64: 1, 128>}, {pipeline_mode = #tpu.pipeline_mode<synchronous>, transform_indices = @transform_3, window_bounds = array<i64: 128, 128>}, {pipeline_mode = #tpu.pipeline_mode<synchronous>, transform_indices = @transform_4, window_bounds = array<i64: 1, 128>}, {transform_indices = @transform_5, window_bounds = array<i64: 8, 128>}]} {
    %c0 = arith.constant 0 : index
    %c0_0 = arith.constant 0 : index
    %0 = vector.load %arg1[%c0, %c0_0] : memref<8x128xf32, #tpu.memory_space<vmem>>, vector<8x128xf32>
    %c0_1 = arith.constant 0 : index
    %c0_2 = arith.constant 0 : index
    %1 = vector.load %arg2[%c0_1, %c0_2] : memref<128x128xf32, #tpu.memory_space<vmem>>, vector<128x128xf32>
    %cst = arith.constant dense<0.000000e+00> : vector<8x128xf32>
    %2 = tpu.matmul %0, %1, %cst {dimension_numbers = #tpu.dot_dimension_numbers<[1], [0], [0], [1], [0, 0, 1, 1], [], []>} : vector<8x128xf32>, vector<128x128xf32>, vector<8x128xf32> -> vector<8x128xf32>
    %c0_3 = arith.constant 0 : index
    %c0_4 = arith.constant 0 : index
    %3 = vector.load %arg3[%c0_3, %c0_4] : memref<1x128xf32, #tpu.memory_space<vmem>>, vector<1x128xf32>
    %4 = vector.broadcast %3 : vector<1x128xf32> to vector<8x128xf32>
    %5 = arith.addf %2, %4 : vector<8x128xf32>
    %cst_5 = arith.constant 0.000000e+00 : f32
    %6 = vector.broadcast %cst_5 : f32 to vector<8x128xf32>
    %7 = arith.cmpf ogt, %5, %6 : vector<8x128xf32>
    %cst_6 = arith.constant 0.00999999977 : f32
    %8 = vector.broadcast %cst_6 : f32 to vector<8x128xf32>
    %9 = arith.mulf %8, %5 : vector<8x128xf32>
    %10 = arith.select %7, %5, %9 : vector<8x128xi1>, vector<8x128xf32>
    %c0_7 = arith.constant 0 : index
    %c0_8 = arith.constant 0 : index
    %11 = vector.load %arg4[%c0_7, %c0_8] : memref<128x128xf32, #tpu.memory_space<vmem>>, vector<128x128xf32>
    %cst_9 = arith.constant dense<0.000000e+00> : vector<8x128xf32>
    %12 = tpu.matmul %10, %11, %cst_9 {dimension_numbers = #tpu.dot_dimension_numbers<[1], [0], [0], [1], [0, 0, 1, 1], [], []>} : vector<8x128xf32>, vector<128x128xf32>, vector<8x128xf32> -> vector<8x128xf32>
    %c0_10 = arith.constant 0 : index
    %c0_11 = arith.constant 0 : index
    %13 = vector.load %arg5[%c0_10, %c0_11] : memref<1x128xf32, #tpu.memory_space<vmem>>, vector<1x128xf32>
    %14 = vector.broadcast %13 : vector<1x128xf32> to vector<8x128xf32>
    %15 = arith.addf %12, %14 : vector<8x128xf32>
    %c0_12 = arith.constant 0 : index
    %c0_13 = arith.constant 0 : index
    %16 = vector.load %arg6[%c0_12, %c0_13] : memref<8x128xf32, #tpu.memory_space<vmem>>, vector<8x128xf32>
    tpu.vector_store %arg6[%c0_12, %c0_13], %15 {strides = array<i32>} : memref<8x128xf32, #tpu.memory_space<vmem>>, vector<8x128xf32>,
    return
  }
  func.func @transform_0(%arg0: i32) -> (i32, i32) {
    %c0_i32 = arith.constant 0 : i32
    %c0_i32_0 = arith.constant 0 : i32
    return %arg0, %c0_i32 : i32, i32
  }
  func.func @transform_1(%arg0: i32) -> (i32, i32) {
    %c0_i32 = arith.constant 0 : i32
    %c0_i32_0 = arith.constant 0 : i32
    %c0_i32_1 = arith.constant 0 : i32
    return %c0_i32, %c0_i32_0 : i32, i32
  }
  func.func @transform_2(%arg0: i32) -> (i32, i32) {
    %c0_i32 = arith.constant 0 : i32
    %c0_i32_0 = arith.constant 0 : i32
    %c0_i32_1 = arith.constant 0 : i32
    return %c0_i32, %c0_i32_0 : i32, i32
  }
  func.func @transform_3(%arg0: i32) -> (i32, i32) {
    %c0_i32 = arith.constant 0 : i32
    %c0_i32_0 = arith.constant 0 : i32
    %c0_i32_1 = arith.constant 0 : i32
    return %c0_i32, %c0_i32_0 : i32, i32
  }
  func.func @transform_4(%arg0: i32) -> (i32, i32) {
    %c0_i32 = arith.constant 0 : i32
    %c0_i32_0 = arith.constant 0 : i32
    %c0_i32_1 = arith.constant 0 : i32
    return %c0_i32, %c0_i32_0 : i32, i32
  }
  func.func @transform_5(%arg0: i32) -> (i32, i32) {
    %c0_i32 = arith.constant 0 : i32
    %c0_i32_0 = arith.constant 0 : i32
    return %arg0, %c0_i32 : i32, i32
  }
}

module attributes {stable_mosaic.version = 11 : i64} {
  func.func @_mlp_kernel_resident(%arg0: i32, %arg1: memref<8x128xf32, #tpu.memory_space<vmem>>, %arg2: memref<128x128xf32, #tpu.memory_space<vmem>>, %arg3: memref<1x128xf32, #tpu.memory_space<vmem>>, %arg4: memref<128x128xf32, #tpu.memory_space<vmem>>, %arg5: memref<1x128xf32, #tpu.memory_space<vmem>>, %arg6: memref<8x128xf32, #tpu.memory_space<vmem>>) attributes {dimension_semantics = [#tpu.dimension_semantics<parallel>], iteration_bounds = array<i64: 2>, scalar_prefetch = 0 : i64, scratch_operands = 0 : i64, tpu.core_type = #tpu.core_type<tc>, window_params = [{transform_indices = @transform_0, window_bounds = array<i64: 8, 128>}, {pipeline_mode = #tpu.pipeline_mode<synchronous>, transform_indices = @transform_1, window_bounds = array<i64: 128, 128>}, {pipeline_mode = #tpu.pipeline_mode<synchronous>, transform_indices = @transform_2, window_bounds = array<i64: 1, 128>}, {pipeline_mode = #tpu.pipeline_mode<synchronous>, transform_indices = @transform_3, window_bounds = array<i64: 128, 128>}, {pipeline_mode = #tpu.pipeline_mode<synchronous>, transform_indices = @transform_4, window_bounds = array<i64: 1, 128>}, {transform_indices = @transform_5, window_bounds = array<i64: 8, 128>}]} {
    %c0 = arith.constant 0 : index
    %c0_0 = arith.constant 0 : index
    %0 = vector.load %arg1[%c0, %c0_0] : memref<8x128xf32, #tpu.memory_space<vmem>>, vector<8x128xf32>
    %c0_1 = arith.constant 0 : index
    %c0_2 = arith.constant 0 : index
    %1 = vector.load %arg2[%c0_1, %c0_2] : memref<128x128xf32, #tpu.memory_space<vmem>>, vector<128x128xf32>
    %cst = arith.constant dense<0.000000e+00> : vector<8x128xf32>
    %2 = tpu.matmul %0, %1, %cst {dimension_numbers = #tpu.dot_dimension_numbers<[1], [0], [0], [1], [0, 0, 1, 1], [], []>} : vector<8x128xf32>, vector<128x128xf32>, vector<8x128xf32> -> vector<8x128xf32>
    %c0_3 = arith.constant 0 : index
    %c0_4 = arith.constant 0 : index
    %3 = vector.load %arg3[%c0_3, %c0_4] : memref<1x128xf32, #tpu.memory_space<vmem>>, vector<1x128xf32>
    %4 = vector.broadcast %3 : vector<1x128xf32> to vector<8x128xf32>
    %5 = arith.addf %2, %4 : vector<8x128xf32>
    %cst_5 = arith.constant 0.000000e+00 : f32
    %6 = vector.broadcast %cst_5 : f32 to vector<8x128xf32>
    %7 = arith.cmpf ogt, %5, %6 : vector<8x128xf32>
    %cst_6 = arith.constant 0.00999999977 : f32
    %8 = vector.broadcast %cst_6 : f32 to vector<8x128xf32>
    %9 = arith.mulf %8, %5 : vector<8x128xf32>
    %10 = arith.select %7, %5, %9 : vector<8x128xi1>, vector<8x128xf32>
    %c0_7 = arith.constant 0 : index
    %c0_8 = arith.constant 0 : index
    %11 = vector.load %arg4[%c0_7, %c0_8] : memref<128x128xf32, #tpu.memory_space<vmem>>, vector<128x128xf32>
    %cst_9 = arith.constant dense<0.000000e+00> : vector<8x128xf32>
    %12 = tpu.matmul %10, %11, %cst_9 {dimension_numbers = #tpu.dot_dimension_numbers<[1], [0], [0], [1], [0, 0, 1, 1], [], []>} : vector<8x128xf32>, vector<128x128xf32>, vector<8x128xf32> -> vector<8x128xf32>
    %c0_10 = arith.constant 0 : index
    %c0_11 = arith.constant 0 : index
    %13 = vector.load %arg5[%c0_10, %c0_11] : memref<1x128xf32, #tpu.memory_space<vmem>>, vector<1x128xf32>
    %14 = vector.broadcast %13 : vector<1x128xf32> to vector<8x128xf32>
    %15 = arith.addf %12, %14 : vector<8x128xf32>
    %c0_12 = arith.constant 0 : index
    %c0_13 = arith.constant 0 : index
    %16 = vector.load %arg6[%c0_12, %c0_13] : memref<8x128xf32, #tpu.memory_space<vmem>>, vector<8x128xf32>
    tpu.vector_store %arg6[%c0_12, %c0_13], %15 {strides = array<i32>} : memref<8x128xf32, #tpu.memory_space<vmem>>, vector<8x128xf32>,
    return
  }
  func.func @transform_0(%arg0: i32) -> (i32, i32) {
    %c0_i32 = arith.constant 0 : i32
    %c0_i32_0 = arith.constant 0 : i32
    return %arg0, %c0_i32 : i32, i32
  }
  func.func @transform_1(%arg0: i32) -> (i32, i32) {
    %c0_i32 = arith.constant 0 : i32
    %c0_i32_0 = arith.constant 0 : i32
    %c0_i32_1 = arith.constant 0 : i32
    return %c0_i32, %c0_i32_0 : i32, i32
  }
  func.func @transform_2(%arg0: i32) -> (i32, i32) {
    %c0_i32 = arith.constant 0 : i32
    %c0_i32_0 = arith.constant 0 : i32
    %c0_i32_1 = arith.constant 0 : i32
    return %c0_i32, %c0_i32_0 : i32, i32
  }
  func.func @transform_3(%arg0: i32) -> (i32, i32) {
    %c0_i32 = arith.constant 0 : i32
    %c0_i32_0 = arith.constant 0 : i32
    %c0_i32_1 = arith.constant 0 : i32
    return %c0_i32, %c0_i32_0 : i32, i32
  }
  func.func @transform_4(%arg0: i32) -> (i32, i32) {
    %c0_i32 = arith.constant 0 : i32
    %c0_i32_0 = arith.constant 0 : i32
    %c0_i32_1 = arith.constant 0 : i32
    return %c0_i32, %c0_i32_0 : i32, i32
  }
  func.func @transform_5(%arg0: i32) -> (i32, i32) {
    %c0_i32 = arith.constant 0 : i32
    %c0_i32_0 = arith.constant 0 : i32
    return %arg0, %c0_i32 : i32, i32
  }
}

</mosaic_0001>

<bundles_post_ra>
// kernel: tpu_custom_call.1
= control target key start
LH: loop header
LB: loop body
LE: loop exit
PB: predicated region body
PF: predicated region fallthrough
CT: control target
= control target key end

     0   :  { %10 = vsyncpa [#allocation3], 0  ;;  %s1260_s0 = inlined_call_operand.hbm [shape: f32[16,128], index: 0, kind: input, shape index: {}]   ;;  %s1261_s1 = inlined_call_operand.hbm [shape: f32[128,128], index: 1, kind: input, shape index: {}]   ;;  %s1262_s2 = inlined_call_operand.vmem [shape: f32[1,128], index: 2, kind: input, shape index: {}]   ;;  %s1263_s3 = inlined_call_operand.hbm [shape: f32[128,128], index: 3, kind: input, shape index: {}]   ;;  %s1264_s4 = inlined_call_operand.vmem [shape: f32[1,128], index: 4, kind: input, shape index: {}]   ;;  %s1265_s5 = inlined_call_operand.hbm [shape: f32[16,128], index: 5, kind: output, shape index: {}]  }
   0x1   :  { %12 = vsyncpa [#allocation3 + $0x1], 0 }
   0x2   :  { %13 = vsyncpa [#allocation6], 0 }
   0x3   :  { %14 = vsyncpa [#allocation4], 0 }
   0x4   :  { %16 = vsyncpa [#allocation4 + $0x1], 0  ;;  %s1002_s18 = smov 0   ;;  %s1004_s19 = smov 0  }
   0x5   :  { %s1006_s20 = smov 0   ;;  %s1008_s21 = smov 0  }
   0x6 LB: > { %s1023_s22 = sadd.s32 4294967295, %s961_s21   ;;  %s563_s23 = sadd.s32 4294967294, %s961_s21   ;;  %s961_s21 = sphi %s1008_s21, %s1285_s21   ;;  %s957_s20 = sphi %s1006_s20, %s1284_s20   ;;  %s953_s19 = sphi %s1004_s19, %s1283_s19   ;;  %s949_s18 = sphi %s1002_s18, %s1282_s18  }
   0x7   : > { %p42_p0 = scmp.ne.s32.totalorder %s953_s19, %s949_s18  ;;  %p1266_p1 = scmp.eq.s32.totalorder %s1023_s22, 0 }
   0x8   : > { %p156_p3 = scmp.eq.s32.totalorder %s563_s23, 1  ;;  %p564_p5 = scmp.ge.s32.totalorder %s961_s21, 1 }
   0x9   : > { %p1032_p4 = por %p1266_p1, %p42_p0  ;;  %p163_p7 = scmp.lt.s32.totalorder %s961_s21, 3 }
   0xa   : > { %p1037_p6 = por %p156_p3, %p42_p0  ;;  %s963_s27 = smov [#allocation5]  }
   0xb   : > { %s1269_s24 = scalar_select %p1032_p4, 1, 0 }
   0xc   : > { %s1270_s25 = scalar_select %p1037_p6, 1, 0 }
   0xd   : > { %p1042_p8 = pnand %p564_p5, %p163_p7  ;;  %s175_s28 = sshll.u32 %s963_s27, 4  ;;  %s1046_s28 = int_to_ptr.vmem [resolvable:$true] %s175_s28 }
   0xe   : > { %s964_s30 = smov [#allocation7]   ;;  %s805_s9 = scalar_lea.hbm %s1261_s1, 2048 }
   0xf   : > { %p745_p9 = pneg %p1042_p8  ;;  %s191_s6 = sshll.u32 %s964_s30, 4  ;;  %s1057_s6 = int_to_ptr.vmem [resolvable:$true] %s191_s6 }
  0x10   : > { %p806_p12 = scmp.ne.s32.totalorder %s1261_s1, %s805_s9  ;;  %p812_p5 = scmp.lt.u32.totalorder %s805_s9, %s1261_s1 }
  0x11   : > { %p1053_p11 = pnand %p745_p9, %p1266_p1 }
  0x13   : > { %p807_p13 = pneg %p1053_p11 }
  0x15   : > { %p808_p0 = pnand %p807_p13, %p806_p12 }
  0x17   : > { %p809_p3 = pneg %p808_p0 }
  0x19   : > { %p814_p7 = pnand %p812_p5, %p809_p3 }
  0x1b   : > { %817 = shalt.err (!%p814_p7)
}
  0x1c   : > { %s818_s14 = scalar_lea.vmem %s1046_s28, 2048  ;;  %p826_p2 = scmp.lt.s32.totalorder %s1046_s28, %s1046_s28 }
  0x1d   : > { %p819_p9 = scmp.ne.s32.totalorder %s1046_s28, %s818_s14  ;;  %p827_p12 = scmp.lt.s32.totalorder %s818_s14, %s818_s14 }
  0x1f   : > { %p821_p10 = pnand %p819_p9, %p807_p13  ;;  %p828_p0 = por %p827_p12, %p826_p2 }
  0x21   : > { %p822_p1 = pneg %p821_p10 }
  0x23   : > { %p829_p6 = pnand %p828_p0, %p822_p1 }
  0x25   : > { %832 = shalt.err (!%p829_p6)
}
  0x26   : > { %s965_s15 = smov 128   ;;  %s966_s16 = smov 8  }
  0x27   : > { %748 = dma.hbm_to_vmem [thread:$0]  (!%p1053_p11), %s1261_s1, 2048, %s1046_s28, [#allocation6], %s965_s15, %s965_s15, %s966_s16  }
  0x28   : > { %s833_s7 = scalar_lea.hbm %s1263_s3, 2048 }
  0x29   : > { %p834_p2 = scmp.ne.s32.totalorder %s1263_s3, %s833_s7  ;;  %p840_p10 = scmp.lt.u32.totalorder %s833_s7, %s1263_s3 }
  0x2b   : > { %p836_p1 = pnand %p834_p2, %p807_p13 }
  0x2d   : > { %p837_p6 = pneg %p836_p1 }
  0x2f   : > { %p842_p3 = pnand %p840_p10, %p837_p6 }
  0x31   : > { %845 = shalt.err (!%p842_p3)
}
  0x32   : > { %s846_s28 = scalar_lea.vmem %s1057_s6, 2048  ;;  %p854_p12 = scmp.lt.s32.totalorder %s1057_s6, %s1057_s6 }
  0x33   : > { %p847_p5 = scmp.ne.s32.totalorder %s1057_s6, %s846_s28  ;;  %p855_p0 = scmp.lt.s32.totalorder %s846_s28, %s846_s28 }
  0x35   : > { %p849_p7 = pnand %p847_p5, %p807_p13  ;;  %p856_p2 = por %p855_p0, %p854_p12 }
  0x37   : > { %p850_p9 = pneg %p849_p7 }
  0x39   : > { %p857_p1 = pnand %p856_p2, %p850_p9 }
  0x3b   : > { %860 = shalt.err (!%p857_p1)
}
  0x3c   : > { %751 = dma.hbm_to_vmem [thread:$0]  (!%p1053_p11), %s1263_s3, 2048, %s1057_s6, [#allocation6], %s965_s15, %s965_s15, %s966_s16  }
  0x3d   : > { %s1112_s14 = sadd.s32 1, %s961_s21   ;;  %s29_s29 = sadd.s32 1, %s957_s20 }
  0x3e   : > { %s26_s17 = ssub.s32 %s961_s21, %s1112_s14  ;;  %p36_p13 = scmp.ne.s32.totalorder %s957_s20, %s953_s19 }
  0x3f   : > { %p27_p6 = scmp.eq.s32.totalorder %s26_s17, 0  ;;  %p37_p10 = scmp.eq.s32.totalorder %s961_s21, 0 }
  0x40   : > { %p1273_p3 = scmp.eq.s32.totalorder %s1023_s22, 1  ;;  %p762_p7 = scmp.lt.s32.totalorder %s961_s21, 2 }
  0x41   : > { %s1128_s27 = scalar_select %p27_p6, %s957_s20, %s29_s29  }
  0x42   : > { %p1122_p5 = por %p1273_p3, %p36_p13  ;;  %p38_p9 = por %p37_p10, %p36_p13 }
  0x43   : > { %s208_s30 = sand.u32 1, %s957_s20   ;;  %s569_s6 = sshll.u32 %s961_s21, 7 }
  0x44   : > { %s1274_s23 = scalar_select %p1122_p5, 1, 0 }
  0x45   : > { %s568_s7 = sshll.u32 %s208_s30, 3  ;;  %s1135_s8 = scalar_lea.hbm %s1260_s0, %s569_s6 }
  0x46   : > { %s212_s9 = scalar_lea.vmem [#allocation2], %s568_s7  ;;  %p1139_p11 = pnand %p762_p7, %p38_p9 }
  0x47   : > { %s219_s10 = sshll.u32 %s212_s9, 4  ;;  %s209_s28 = scalar_lea.sflag [#allocation3], %s208_s30  ;;  %s1137_s10 = int_to_ptr.vmem [resolvable:$true] %s219_s10 }
  0x48   : > { %s861_s12 = scalar_lea.hbm %s1135_s8, 128  ;;  %p863_p0 = pneg %p1139_p11 }
  0x49   : > { %p862_p12 = scmp.ne.s32.totalorder %s1135_s8, %s861_s12  ;;  %s866_s17 = scalar_lea.hbm %s1260_s0, 256 }
  0x4a   : > { %p867_p13 = scmp.lt.u32.totalorder %s1135_s8, %s1260_s0  ;;  %p868_p6 = scmp.lt.u32.totalorder %s866_s17, %s861_s12 }
  0x4b   : > { %p864_p2 = pnand %p863_p0, %p862_p12  ;;  %p870_p3 = scmp.lt.u32.totalorder %s861_s12, %s1135_s8 }
  0x4c   : > { %p869_p10 = por %p868_p6, %p867_p13 }
  0x4d   : > { %p865_p1 = pneg %p864_p2 }
  0x4e   : > { %p871_p7 = por %p870_p3, %p869_p10 }
  0x50   : > { %p872_p9 = pnand %p871_p7, %p865_p1 }
  0x52   : > { %875 = shalt.err (!%p872_p9)
}
  0x53   : > { %s876_s30 = scalar_lea.vmem %s1137_s10, 128  ;;  %s967_s15 = smov [#allocation2]  }
  0x54   : > { %p877_p12 = scmp.ne.s32.totalorder %s1137_s10, %s876_s30  ;;  %s881_s16 = sshll.u32 %s967_s15, 4  ;;  %s882_s16 = int_to_ptr.vmem [resolvable:$false] %s881_s16 }
  0x55   : > { %s883_s9 = scalar_lea.vmem %s882_s16, 256  ;;  %p884_p4 = scmp.lt.s32.totalorder %s1137_s10, %s882_s16 }
  0x56   : > { %p879_p2 = pnand %p877_p12, %p863_p0  ;;  %p885_p13 = scmp.lt.s32.totalorder %s883_s9, %s876_s30 }
  0x58   : > { %p880_p5 = pneg %p879_p2  ;;  %p886_p6 = por %p885_p13, %p884_p4 }
  0x5a   : > { %p887_p10 = pnand %p886_p6, %p880_p5 }
  0x5c   : > { %890 = shalt.err (!%p887_p10)
}
  0x5d   : > { %755 = dma.hbm_to_vmem [thread:$0]  (!%p1139_p11), %s1135_s8, 128, %s1137_s10, %s209_s28  }
  0x5e   : > { %228 = sbr.rel (%p1042_p8) target bundleno = 584 (0x248), region = 40  ;;  %s1171_s12 = sand.u32 (!%p1042_p8), 1, %s953_s19  }
  0x5f   : > { %s571_s13 = sshll.u32 (!%p1042_p8), %s1171_s12, 3  ;;  %s231_s29 = scalar_lea.sflag (!%p1042_p8), [#allocation3], %s1171_s12 }
  0x60   : > { %s1177_s17 = scalar_lea.vmem (!%p1042_p8), [#allocation2], %s571_s13  ;;  %p1276_p4 = scmp.ne.s32.totalorder (!%p1042_p8), %s1269_s24, 0 }
  0x65   : > { %936 = dma.done.wait (%p1276_p4), %s231_s29, 128  }
  0x66   : > { %938 = vsyncadd (%p1276_p4), %s231_s29, 4294967168  ;;  %p1277_p5 = scmp.eq.s32.totalorder %s1023_s22, 0 }
  0x68   : > { %940 = dma.done.wait (%p1277_p5), [#allocation6], 4096   ;;  %p1278_p8 = pmov %p1277_p5 }
  0x69   : > { %v968_v0 = vmov 0.0|0.0   ;;  %vm969_vm0 = vmmov 0   ;;  %v970_v1 = vmov 0.0   ;;  %v270_v2 = vld [vmem:[#allocation5] sm:$0xff]  ;;  %v271_v3 = vld [vmem:[#allocation5 + $0x8] sm:$0xff]  ;;  %v272_v4 = vld [vmem:[#allocation5 + $0x10] sm:$0xff] }
  0x6a   : > { %942 = vsyncadd (%p1278_p8), [#allocation6], 4294963200  ;;  %685 = vmatprep.subr.bf16.mxu0 %v968_v0  ;;  %647 = vmatprep.mubr.msk.f32.mxu0 %vm969_vm0, %v970_v1  ;;  %v686_v5 = vpack.c.bf16 %v271_v3, %v270_v2  ;;  %v273_v6 = vld [vmem:[#allocation5 + $0x18] sm:$0xff]  ;;  %v274_v8 = vld [vmem:[#allocation5 + $0x20] sm:$0xff]  ;;  %s578_s11 = sshll.u32 %s1023_s22, 7  ;;  %s268_s28 = scalar_lea.vmem [#allocation8], %s571_s13 }
  0x6b   : > { %709 = vmatprep.subr.bf16.mxu1 %v968_v0  ;;  %682 = vmatprep.mubr.msk.f32.mxu1 %vm969_vm0, %v970_v1  ;;  %v689_v7 = vpack.c.bf16 %v273_v6, %v272_v4  ;;  %v275_v9 = vld [vmem:[#allocation5 + $0x28] sm:$0xff]  ;;  %v366_v10 = vld [vmem:[#allocation7] sm:$0xff]  ;;  %v368_v12 = vld [vmem:[#allocation7 + $0x10] sm:$0xff]  ;;  %s474_s7 = sshll.u32 %s268_s28, 4  ;;  %s1216_s15 = scalar_lea.hbm %s1265_s5, %s578_s11  ;;  %s1218_s7 = int_to_ptr.vmem [resolvable:$true] %s474_s7 }
  0x6c   : > { %687 = vmatpush3.bf16.msra.mxu0 %v686_v5  ;;  %v367_v11 = vld [vmem:[#allocation7 + $0x8] sm:$0xff]  ;;  %v369_v13 = vld [vmem:[#allocation7 + $0x18] sm:$0xff]  ;;  %v692_v14 = vpack.c.bf16 %v275_v9, %v274_v8  ;;  %v276_v16 = vld [vmem:[#allocation5 + $0x30] sm:$0xff]  ;;  %s461_s16 = scalar_lea.sflag [#allocation4], %s1171_s12  ;;  %s891_s9 = scalar_lea.vmem %s1218_s7, 128 }
  0x6d   : > { %688 = vmatprep.subr.bf16.mxu0 %v968_v0  ;;  %v710_v15 = vpack.c.bf16 %v367_v11, %v366_v10  ;;  %v277_v17 = vld [vmem:[#allocation5 + $0x38] sm:$0xff]  ;;  %v713_v18 = vpack.c.bf16 %v369_v13, %v368_v12  ;;  %v370_v19 = vld [vmem:[#allocation7 + $0x20] sm:$0xff]  ;;  %v371_v20 = vld [vmem:[#allocation7 + $0x28] sm:$0xff]  ;;  %p892_p11 = scmp.ne.s32.totalorder %s1218_s7, %s891_s9  ;;  %p1279_p0 = scmp.ne.s32.totalorder %s1274_s23, 0 }
  0x6e   : > { %v695_v21 = vpack.c.bf16 %v277_v17, %v276_v16  ;;  %v278_v22 = vld [vmem:[#allocation5 + $0x40] sm:$0xff]  ;;  %v279_v23 = vld [vmem:[#allocation5 + $0x48] sm:$0xff]  ;;  %v716_v24 = vpack.c.bf16 %v371_v20, %v370_v19  ;;  %v372_v25 = vld [vmem:[#allocation7 + $0x30] sm:$0xff]  ;;  %s971_s22 = smov [#allocation8]  }
  0x6f   : > { %711 = vmatpush3.bf16.msra.mxu1 %v710_v15  ;;  %v373_v26 = vld [vmem:[#allocation7 + $0x38] sm:$0xff]  ;;  %v698_v27 = vpack.c.bf16 %v279_v23, %v278_v22  ;;  %v280_v28 = vld [vmem:[#allocation5 + $0x50] sm:$0xff]  ;;  %v374_v31 = vld [vmem:[#allocation7 + $0x40] sm:$0xff]  ;;  %p893_p1 = pnand %p892_p11, %p1279_p0  ;;  %s895_s13 = sshll.u32 %s971_s22, 4  ;;  %s896_s13 = int_to_ptr.vmem [resolvable:$false] %s895_s13 }
  0x70   : > { %690 = vmatpush3.bf16.msra.mxu0 %v689_v7  ;;  %712 = vmatprep.subr.bf16.mxu1 %v968_v0  ;;  %v281_v29 = vld [vmem:[#allocation5 + $0x58] sm:$0xff]  ;;  %v719_v30 = vpack.c.bf16 %v373_v26, %v372_v25  ;;  %v375_v32 = vld [vmem:[#allocation7 + $0x48] sm:$0xff]  ;;  %v282_v34 = vld [vmem:[#allocation5 + $0x60] sm:$0xff]  ;;  %s897_s29 = scalar_lea.vmem %s896_s13, 256  ;;  %p898_p7 = scmp.lt.s32.totalorder %s1218_s7, %s896_s13 }
  0x71   : > { %691 = vmatprep.subr.bf16.mxu0 %v968_v0  ;;  %v701_v33 = vpack.c.bf16 %v281_v29, %v280_v28  ;;  %v283_v35 = vld [vmem:[#allocation5 + $0x68] sm:$0xff]  ;;  %v722_v36 = vpack.c.bf16 %v375_v32, %v374_v31  ;;  %v376_v37 = vld [vmem:[#allocation7 + $0x50] sm:$0xff]  ;;  %v377_v38 = vld [vmem:[#allocation7 + $0x58] sm:$0xff]  ;;  %p894_p3 = pneg %p893_p1  ;;  %p899_p9 = scmp.lt.s32.totalorder %s897_s29, %s891_s9 }
  0x72   : > { %v704_v39 = vpack.c.bf16 %v283_v35, %v282_v34  ;;  %v284_v40 = vld [vmem:[#allocation5 + $0x70] sm:$0xff]  ;;  %v285_v41 = vld [vmem:[#allocation5 + $0x78] sm:$0xff]  ;;  %v725_v42 = vpack.c.bf16 %v377_v38, %v376_v37  ;;  %v378_v43 = vld [vmem:[#allocation7 + $0x60] sm:$0xff] }
  0x73   : > { %714 = vmatpush3.bf16.msra.mxu1 %v713_v18  ;;  %v379_v44 = vld [vmem:[#allocation7 + $0x68] sm:$0xff]  ;;  %v707_v45 = vpack.c.bf16 %v285_v41, %v284_v40  ;;  %v269_v47 = vld [vmem:[%s1177_s17] sm:$0xff]  ;;  %p900_p12 = por %p899_p9, %p898_p7 }
  0x74   : > { %693 = vmatpush3.bf16.msra.mxu0 %v692_v14  ;;  %715 = vmatprep.subr.bf16.mxu1 %v968_v0  ;;  %v728_v46 = vpack.c.bf16 %v379_v44, %v378_v43  ;;  %v380_v48 = vld [vmem:[#allocation7 + $0x70] sm:$0xff]  ;;  %v381_v49 = vld [vmem:[#allocation7 + $0x78] sm:$0xff] }
  0x75   : > { %694 = vmatprep.subr.bf16.mxu0 %v968_v0  ;;  %v731_v50 = vpack.c.bf16 %v381_v49, %v380_v48  ;;  %v575_v51 = vld [vmem:[%s1262_s2] ss:$0 sm:$0xff]  ;;  %p901_p2 = pnand %p900_p12, %p894_p3 }
  0x76   : > { %v576_v57 = vld [vmem:[%s1264_s4] ss:$0 sm:$0xff] }
  0x77   : > { %717 = vmatpush3.bf16.msra.mxu1 %v716_v24 }
  0x78   : > { %696 = vmatpush3.bf16.msra.mxu0 %v695_v21  ;;  %718 = vmatprep.subr.bf16.mxu1 %v968_v0 }
  0x79   : > { %697 = vmatprep.subr.bf16.mxu0 %v968_v0 }
  0x7b   : > { %720 = vmatpush3.bf16.msra.mxu1 %v719_v30 }
  0x7c   : > { %699 = vmatpush3.bf16.msra.mxu0 %v698_v27  ;;  %721 = vmatprep.subr.bf16.mxu1 %v968_v0 }
  0x7d   : > { %700 = vmatprep.subr.bf16.mxu0 %v968_v0 }
  0x7f   : > { %723 = vmatpush3.bf16.msra.mxu1 %v722_v36 }
  0x80   : > { %702 = vmatpush3.bf16.msra.mxu0 %v701_v33  ;;  %724 = vmatprep.subr.bf16.mxu1 %v968_v0 }
  0x81   : > { %703 = vmatprep.subr.bf16.mxu0 %v968_v0 }
  0x83   : > { %726 = vmatpush3.bf16.msra.mxu1 %v725_v42 }
  0x84   : > { %705 = vmatpush3.bf16.msra.mxu0 %v704_v39  ;;  %727 = vmatprep.subr.bf16.mxu1 %v968_v0 }
  0x85   : > { %706 = vmatprep.subr.bf16.mxu0 %v968_v0 }
  0x87   : > { %729 = vmatpush3.bf16.msra.mxu1 %v728_v46 }
  0x88   : > { %708 = vmatpush3.bf16.msra.mxu0 %v707_v45  ;;  %730 = vmatprep.subr.bf16.mxu1 %v968_v0 }
  0x8b   : > { %648 = vmatmul.mubr.f32.vlgmr.msra.gmra.mrb[0].mxu0 %v269_v47  ;;  %732 = vmatpush3.bf16.msra.mxu1 %v731_v50 }
 0x15e   : > { %v359_v52 = vpop.f32.mrb[0].mxu0 }
 0x15f   : > { %v360_v53 = vadd.f32 %v575_v51, %v359_v52  ;;  %v649_v54 = vpop.f32.mrb[1].mxu0 }
 0x161   : > { %v364_v55 = vmul.f32 0.01, %v360_v53  ;;  %vm363_vm1 = vcmp.gt.f32.partialorder %v360_v53, 0.0 }
 0x163   : > { %v365_v56 = vsel %vm363_vm1, %v360_v53, %v364_v55 }
 0x164   : > { %683 = vmatmul.mubr.f32.vlgmr.msra.gmra.mrb[0].mxu1 %v365_v56 }
 0x237   : > { %v455_v58 = vpop.f32.mrb[0].mxu1 }
 0x238   : > { %v456_v59 = vadd.f32 %v576_v57, %v455_v58  ;;  %v684_v60 = vpop.f32.mrb[1].mxu1 }
 0x23a   : > { %459 = vst [vmem:[%s268_s28] sm:$0xff] %v456_v59 }
 0x23b   : > { %904 = shalt.err (!%p901_p2)
}
 0x23c   : > { %s905_s12 = scalar_lea.hbm %s1216_s15, 128  ;;  %s909_s26 = scalar_lea.hbm %s1265_s5, 256 }
 0x23d   : > { %p906_p13 = scmp.ne.s32.totalorder %s1216_s15, %s905_s12  ;;  %p910_p4 = scmp.lt.u32.totalorder %s1216_s15, %s1265_s5 }
 0x23e   : > { %p911_p5 = scmp.lt.u32.totalorder %s909_s26, %s905_s12  ;;  %p913_p11 = scmp.lt.u32.totalorder %s905_s12, %s1216_s15 }
 0x23f   : > { %p907_p6 = pnand %p906_p13, %p1279_p0 }
 0x240   : > { %p912_p8 = por %p911_p5, %p910_p4 }
 0x241   : > { %p908_p10 = pneg %p907_p6 }
 0x242   : > { %p914_p1 = por %p913_p11, %p912_p8 }
 0x244   : > { %p915_p3 = pnand %p914_p1, %p908_p10 }
 0x246   : > { %918 = shalt.err (!%p915_p3)
}
 0x247   : > { %743 = dma.vmem_to_hbm [thread:$0]  (%p1279_p0), %s1218_s7, 128, %s1216_s15, %s461_s16  }
 0x248 PF: > { %s486_s11 = sand.u32 1, %s949_s18   ;;  %p1280_p7 = scmp.ne.s32.totalorder %s1270_s25, 0 }
 0x249   : > { %p1281_p9 = scmp.ge.s32.totalorder %s961_s21, 2  ;;  %s487_s28 = scalar_lea.sflag [#allocation4], %s486_s11 }
 0x24b   : > { %p757_p12 = pnand %p1281_p9, %p1280_p7 }
 0x24d   : > { %944 = dma.done.wait (!%p757_p12), %s487_s28, 128  }
 0x24e   : > { %946 = vsyncadd (!%p757_p12), %s487_s28, 4294967168  ;;  %p19_p2 = scmp.ge.s32.totalorder %s1112_s14, 4   ;;  %s1282_s18 = smov %s953_s19 }
 0x24f   : > { %s1283_s19 = smov %s957_s20  ;;  %s1284_s20 = smov %s1128_s27 }
 0x250   : > { %s1285_s21 = smov %s1112_s14  ;;  %21 = sbr.rel (!%p19_p2) target bundleno = 6 (0x6), region = 93 }
 0x257   :  { %492 = vsyncpa [#allocation3], 1 }
 0x258   :  { %494 = vsyncpa [#allocation3 + $0x1], 1 }
 0x259   :  { %495 = vsyncpa [#allocation6], 1 }
 0x25a   :  { %496 = vsyncpa [#allocation4], 1 }
 0x25b   :  { %498 = vsyncpa [#allocation4 + $0x1], 1 }

// kernel: tpu_custom_call.1
= control target key start
LH: loop header
LB: loop body
LE: loop exit
PB: predicated region body
PF: predicated region fallthrough
CT: control target
= control target key end

     0   :  { %10 = vsyncpa [#allocation3], 0  ;;  %s1260_s0 = inlined_call_operand.hbm [shape: f32[16,128], index: 0, kind: input, shape index: {}]   ;;  %s1261_s1 = inlined_call_operand.hbm [shape: f32[128,128], index: 1, kind: input, shape index: {}]   ;;  %s1262_s2 = inlined_call_operand.vmem [shape: f32[1,128], index: 2, kind: input, shape index: {}]   ;;  %s1263_s3 = inlined_call_operand.hbm [shape: f32[128,128], index: 3, kind: input, shape index: {}]   ;;  %s1264_s4 = inlined_call_operand.vmem [shape: f32[1,128], index: 4, kind: input, shape index: {}]   ;;  %s1265_s5 = inlined_call_operand.hbm [shape: f32[16,128], index: 5, kind: output, shape index: {}]  }
   0x1   :  { %12 = vsyncpa [#allocation3 + $0x1], 0 }
   0x2   :  { %13 = vsyncpa [#allocation6], 0 }
   0x3   :  { %14 = vsyncpa [#allocation4], 0 }
   0x4   :  { %16 = vsyncpa [#allocation4 + $0x1], 0  ;;  %s1002_s18 = smov 0   ;;  %s1004_s19 = smov 0  }
   0x5   :  { %s1006_s20 = smov 0   ;;  %s1008_s21 = smov 0  }
   0x6 LB: > { %s1023_s22 = sadd.s32 4294967295, %s961_s21   ;;  %s563_s23 = sadd.s32 4294967294, %s961_s21   ;;  %s961_s21 = sphi %s1008_s21, %s1285_s21   ;;  %s957_s20 = sphi %s1006_s20, %s1284_s20   ;;  %s953_s19 = sphi %s1004_s19, %s1283_s19   ;;  %s949_s18 = sphi %s1002_s18, %s1282_s18  }
   0x7   : > { %p42_p0 = scmp.ne.s32.totalorder %s953_s19, %s949_s18  ;;  %p1266_p1 = scmp.eq.s32.totalorder %s1023_s22, 0 }
   0x8   : > { %p156_p3 = scmp.eq.s32.totalorder %s563_s23, 1  ;;  %p564_p5 = scmp.ge.s32.totalorder %s961_s21, 1 }
   0x9   : > { %p1032_p4 = por %p1266_p1, %p42_p0  ;;  %p163_p7 = scmp.lt.s32.totalorder %s961_s21, 3 }
   0xa   : > { %p1037_p6 = por %p156_p3, %p42_p0  ;;  %s963_s27 = smov [#allocation5]  }
   0xb   : > { %s1269_s24 = scalar_select %p1032_p4, 1, 0 }
   0xc   : > { %s1270_s25 = scalar_select %p1037_p6, 1, 0 }
   0xd   : > { %p1042_p8 = pnand %p564_p5, %p163_p7  ;;  %s175_s28 = sshll.u32 %s963_s27, 4  ;;  %s1046_s28 = int_to_ptr.vmem [resolvable:$true] %s175_s28 }
   0xe   : > { %s964_s30 = smov [#allocation7]   ;;  %s805_s9 = scalar_lea.hbm %s1261_s1, 2048 }
   0xf   : > { %p745_p9 = pneg %p1042_p8  ;;  %s191_s6 = sshll.u32 %s964_s30, 4  ;;  %s1057_s6 = int_to_ptr.vmem [resolvable:$true] %s191_s6 }
  0x10   : > { %p806_p12 = scmp.ne.s32.totalorder %s1261_s1, %s805_s9  ;;  %p812_p5 = scmp.lt.u32.totalorder %s805_s9, %s1261_s1 }
  0x11   : > { %p1053_p11 = pnand %p745_p9, %p1266_p1 }
  0x13   : > { %p807_p13 = pneg %p1053_p11 }
  0x15   : > { %p808_p0 = pnand %p807_p13, %p806_p12 }
  0x17   : > { %p809_p3 = pneg %p808_p0 }
  0x19   : > { %p814_p7 = pnand %p812_p5, %p809_p3 }
  0x1b   : > { %817 = shalt.err (!%p814_p7)
}
  0x1c   : > { %s818_s14 = scalar_lea.vmem %s1046_s28, 2048  ;;  %p826_p2 = scmp.lt.s32.totalorder %s1046_s28, %s1046_s28 }
  0x1d   : > { %p819_p9 = scmp.ne.s32.totalorder %s1046_s28, %s818_s14  ;;  %p827_p12 = scmp.lt.s32.totalorder %s818_s14, %s818_s14 }
  0x1f   : > { %p821_p10 = pnand %p819_p9, %p807_p13  ;;  %p828_p0 = por %p827_p12, %p826_p2 }
  0x21   : > { %p822_p1 = pneg %p821_p10 }
  0x23   : > { %p829_p6 = pnand %p828_p0, %p822_p1 }
  0x25   : > { %832 = shalt.err (!%p829_p6)
}
  0x26   : > { %s965_s15 = smov 128   ;;  %s966_s16 = smov 8  }
  0x27   : > { %748 = dma.hbm_to_vmem [thread:$0]  (!%p1053_p11), %s1261_s1, 2048, %s1046_s28, [#allocation6], %s965_s15, %s965_s15, %s966_s16  }
  0x28   : > { %s833_s7 = scalar_lea.hbm %s1263_s3, 2048 }
  0x29   : > { %p834_p2 = scmp.ne.s32.totalorder %s1263_s3, %s833_s7  ;;  %p840_p10 = scmp.lt.u32.totalorder %s833_s7, %s1263_s3 }
  0x2b   : > { %p836_p1 = pnand %p834_p2, %p807_p13 }
  0x2d   : > { %p837_p6 = pneg %p836_p1 }
  0x2f   : > { %p842_p3 = pnand %p840_p10, %p837_p6 }
  0x31   : > { %845 = shalt.err (!%p842_p3)
}
  0x32   : > { %s846_s28 = scalar_lea.vmem %s1057_s6, 2048  ;;  %p854_p12 = scmp.lt.s32.totalorder %s1057_s6, %s1057_s6 }
  0x33   : > { %p847_p5 = scmp.ne.s32.totalorder %s1057_s6, %s846_s28  ;;  %p855_p0 = scmp.lt.s32.totalorder %s846_s28, %s846_s28 }
  0x35   : > { %p849_p7 = pnand %p847_p5, %p807_p13  ;;  %p856_p2 = por %p855_p0, %p854_p12 }
  0x37   : > { %p850_p9 = pneg %p849_p7 }
  0x39   : > { %p857_p1 = pnand %p856_p2, %p850_p9 }
  0x3b   : > { %860 = shalt.err (!%p857_p1)
}
  0x3c   : > { %751 = dma.hbm_to_vmem [thread:$0]  (!%p1053_p11), %s1263_s3, 2048, %s1057_s6, [#allocation6], %s965_s15, %s965_s15, %s966_s16  }
  0x3d   : > { %s1112_s14 = sadd.s32 1, %s961_s21   ;;  %s29_s29 = sadd.s32 1, %s957_s20 }
  0x3e   : > { %s26_s17 = ssub.s32 %s961_s21, %s1112_s14  ;;  %p36_p13 = scmp.ne.s32.totalorder %s957_s20, %s953_s19 }
  0x3f   : > { %p27_p6 = scmp.eq.s32.totalorder %s26_s17, 0  ;;  %p37_p10 = scmp.eq.s32.totalorder %s961_s21, 0 }
  0x40   : > { %p1273_p3 = scmp.eq.s32.totalorder %s1023_s22, 1  ;;  %p762_p7 = scmp.lt.s32.totalorder %s961_s21, 2 }
  0x41   : > { %s1128_s27 = scalar_select %p27_p6, %s957_s20, %s29_s29  }
  0x42   : > { %p1122_p5 = por %p1273_p3, %p36_p13  ;;  %p38_p9 = por %p37_p10, %p36_p13 }
  0x43   : > { %s208_s30 = sand.u32 1, %s957_s20   ;;  %s569_s6 = sshll.u32 %s961_s21, 7 }
  0x44   : > { %s1274_s23 = scalar_select %p1122_p5, 1, 0 }
  0x45   : > { %s568_s7 = sshll.u32 %s208_s30, 3  ;;  %s1135_s8 = scalar_lea.hbm %s1260_s0, %s569_s6 }
  0x46   : > { %s212_s9 = scalar_lea.vmem [#allocation2], %s568_s7  ;;  %p1139_p11 = pnand %p762_p7, %p38_p9 }
  0x47   : > { %s219_s10 = sshll.u32 %s212_s9, 4  ;;  %s209_s28 = scalar_lea.sflag [#allocation3], %s208_s30  ;;  %s1137_s10 = int_to_ptr.vmem [resolvable:$true] %s219_s10 }
  0x48   : > { %s861_s12 = scalar_lea.hbm %s1135_s8, 128  ;;  %p863_p0 = pneg %p1139_p11 }
  0x49   : > { %p862_p12 = scmp.ne.s32.totalorder %s1135_s8, %s861_s12  ;;  %s866_s17 = scalar_lea.hbm %s1260_s0, 256 }
  0x4a   : > { %p867_p13 = scmp.lt.u32.totalorder %s1135_s8, %s1260_s0  ;;  %p868_p6 = scmp.lt.u32.totalorder %s866_s17, %s861_s12 }
  0x4b   : > { %p864_p2 = pnand %p863_p0, %p862_p12  ;;  %p870_p3 = scmp.lt.u32.totalorder %s861_s12, %s1135_s8 }
  0x4c   : > { %p869_p10 = por %p868_p6, %p867_p13 }
  0x4d   : > { %p865_p1 = pneg %p864_p2 }
  0x4e   : > { %p871_p7 = por %p870_p3, %p869_p10 }
  0x50   : > { %p872_p9 = pnand %p871_p7, %p865_p1 }
  0x52   : > { %875 = shalt.err (!%p872_p9)
}
  0x53   : > { %s876_s30 = scalar_lea.vmem %s1137_s10, 128  ;;  %s967_s15 = smov [#allocation2]  }
  0x54   : > { %p877_p12 = scmp.ne.s32.totalorder %s1137_s10, %s876_s30  ;;  %s881_s16 = sshll.u32 %s967_s15, 4  ;;  %s882_s16 = int_to_ptr.vmem [resolvable:$false] %s881_s16 }
  0x55   : > { %s883_s9 = scalar_lea.vmem %s882_s16, 256  ;;  %p884_p4 = scmp.lt.s32.totalorder %s1137_s10, %s882_s16 }
  0x56   : > { %p879_p2 = pnand %p877_p12, %p863_p0  ;;  %p885_p13 = scmp.lt.s32.totalorder %s883_s9, %s876_s30 }
  0x58   : > { %p880_p5 = pneg %p879_p2  ;;  %p886_p6 = por %p885_p13, %p884_p4 }
  0x5a   : > { %p887_p10 = pnand %p886_p6, %p880_p5 }
  0x5c   : > { %890 = shalt.err (!%p887_p10)
}
  0x5d   : > { %755 = dma.hbm_to_vmem [thread:$0]  (!%p1139_p11), %s1135_s8, 128, %s1137_s10, %s209_s28  }
  0x5e   : > { %228 = sbr.rel (%p1042_p8) target bundleno = 584 (0x248), region = 40  ;;  %s1171_s12 = sand.u32 (!%p1042_p8), 1, %s953_s19  }
  0x5f   : > { %s571_s13 = sshll.u32 (!%p1042_p8), %s1171_s12, 3  ;;  %s231_s29 = scalar_lea.sflag (!%p1042_p8), [#allocation3], %s1171_s12 }
  0x60   : > { %s1177_s17 = scalar_lea.vmem (!%p1042_p8), [#allocation2], %s571_s13  ;;  %p1276_p4 = scmp.ne.s32.totalorder (!%p1042_p8), %s1269_s24, 0 }
  0x65   : > { %936 = dma.done.wait (%p1276_p4), %s231_s29, 128  }
  0x66   : > { %938 = vsyncadd (%p1276_p4), %s231_s29, 4294967168  ;;  %p1277_p5 = scmp.eq.s32.totalorder %s1023_s22, 0 }
  0x68   : > { %940 = dma.done.wait (%p1277_p5), [#allocation6], 4096   ;;  %p1278_p8 = pmov %p1277_p5 }
  0x69   : > { %v968_v0 = vmov 0.0|0.0   ;;  %vm969_vm0 = vmmov 0   ;;  %v970_v1 = vmov 0.0   ;;  %v270_v2 = vld [vmem:[#allocation5] sm:$0xff]  ;;  %v271_v3 = vld [vmem:[#allocation5 + $0x8] sm:$0xff]  ;;  %v272_v4 = vld [vmem:[#allocation5 + $0x10] sm:$0xff] }
  0x6a   : > { %942 = vsyncadd (%p1278_p8), [#allocation6], 4294963200  ;;  %685 = vmatprep.subr.bf16.mxu0 %v968_v0  ;;  %647 = vmatprep.mubr.msk.f32.mxu0 %vm969_vm0, %v970_v1  ;;  %v686_v5 = vpack.c.bf16 %v271_v3, %v270_v2  ;;  %v273_v6 = vld [vmem:[#allocation5 + $0x18] sm:$0xff]  ;;  %v274_v8 = vld [vmem:[#allocation5 + $0x20] sm:$0xff]  ;;  %s578_s11 = sshll.u32 %s1023_s22, 7  ;;  %s268_s28 = scalar_lea.vmem [#allocation8], %s571_s13 }
  0x6b   : > { %709 = vmatprep.subr.bf16.mxu1 %v968_v0  ;;  %682 = vmatprep.mubr.msk.f32.mxu1 %vm969_vm0, %v970_v1  ;;  %v689_v7 = vpack.c.bf16 %v273_v6, %v272_v4  ;;  %v275_v9 = vld [vmem:[#allocation5 + $0x28] sm:$0xff]  ;;  %v366_v10 = vld [vmem:[#allocation7] sm:$0xff]  ;;  %v368_v12 = vld [vmem:[#allocation7 + $0x10] sm:$0xff]  ;;  %s474_s7 = sshll.u32 %s268_s28, 4  ;;  %s1216_s15 = scalar_lea.hbm %s1265_s5, %s578_s11  ;;  %s1218_s7 = int_to_ptr.vmem [resolvable:$true] %s474_s7 }
  0x6c   : > { %687 = vmatpush3.bf16.msra.mxu0 %v686_v5  ;;  %v367_v11 = vld [vmem:[#allocation7 + $0x8] sm:$0xff]  ;;  %v369_v13 = vld [vmem:[#allocation7 + $0x18] sm:$0xff]  ;;  %v692_v14 = vpack.c.bf16 %v275_v9, %v274_v8  ;;  %v276_v16 = vld [vmem:[#allocation5 + $0x30] sm:$0xff]  ;;  %s461_s16 = scalar_lea.sflag [#allocation4], %s1171_s12  ;;  %s891_s9 = scalar_lea.vmem %s1218_s7, 128 }
  0x6d   : > { %688 = vmatprep.subr.bf16.mxu0 %v968_v0  ;;  %v710_v15 = vpack.c.bf16 %v367_v11, %v366_v10  ;;  %v277_v17 = vld [vmem:[#allocation5 + $0x38] sm:$0xff]  ;;  %v713_v18 = vpack.c.bf16 %v369_v13, %v368_v12  ;;  %v370_v19 = vld [vmem:[#allocation7 + $0x20] sm:$0xff]  ;;  %v371_v20 = vld [vmem:[#allocation7 + $0x28] sm:$0xff]  ;;  %p892_p11 = scmp.ne.s32.totalorder %s1218_s7, %s891_s9  ;;  %p1279_p0 = scmp.ne.s32.totalorder %s1274_s23, 0 }
  0x6e   : > { %v695_v21 = vpack.c.bf16 %v277_v17, %v276_v16  ;;  %v278_v22 = vld [vmem:[#allocation5 + $0x40] sm:$0xff]  ;;  %v279_v23 = vld [vmem:[#allocation5 + $0x48] sm:$0xff]  ;;  %v716_v24 = vpack.c.bf16 %v371_v20, %v370_v19  ;;  %v372_v25 = vld [vmem:[#allocation7 + $0x30] sm:$0xff]  ;;  %s971_s22 = smov [#allocation8]  }
  0x6f   : > { %711 = vmatpush3.bf16.msra.mxu1 %v710_v15  ;;  %v373_v26 = vld [vmem:[#allocation7 + $0x38] sm:$0xff]  ;;  %v698_v27 = vpack.c.bf16 %v279_v23, %v278_v22  ;;  %v280_v28 = vld [vmem:[#allocation5 + $0x50] sm:$0xff]  ;;  %v374_v31 = vld [vmem:[#allocation7 + $0x40] sm:$0xff]  ;;  %p893_p1 = pnand %p892_p11, %p1279_p0  ;;  %s895_s13 = sshll.u32 %s971_s22, 4  ;;  %s896_s13 = int_to_ptr.vmem [resolvable:$false] %s895_s13 }
  0x70   : > { %690 = vmatpush3.bf16.msra.mxu0 %v689_v7  ;;  %712 = vmatprep.subr.bf16.mxu1 %v968_v0  ;;  %v281_v29 = vld [vmem:[#allocation5 + $0x58] sm:$0xff]  ;;  %v719_v30 = vpack.c.bf16 %v373_v26, %v372_v25  ;;  %v375_v32 = vld [vmem:[#allocation7 + $0x48] sm:$0xff]  ;;  %v282_v34 = vld [vmem:[#allocation5 + $0x60] sm:$0xff]  ;;  %s897_s29 = scalar_lea.vmem %s896_s13, 256  ;;  %p898_p7 = scmp.lt.s32.totalorder %s1218_s7, %s896_s13 }
  0x71   : > { %691 = vmatprep.subr.bf16.mxu0 %v968_v0  ;;  %v701_v33 = vpack.c.bf16 %v281_v29, %v280_v28  ;;  %v283_v35 = vld [vmem:[#allocation5 + $0x68] sm:$0xff]  ;;  %v722_v36 = vpack.c.bf16 %v375_v32, %v374_v31  ;;  %v376_v37 = vld [vmem:[#allocation7 + $0x50] sm:$0xff]  ;;  %v377_v38 = vld [vmem:[#allocation7 + $0x58] sm:$0xff]  ;;  %p894_p3 = pneg %p893_p1  ;;  %p899_p9 = scmp.lt.s32.totalorder %s897_s29, %s891_s9 }
  0x72   : > { %v704_v39 = vpack.c.bf16 %v283_v35, %v282_v34  ;;  %v284_v40 = vld [vmem:[#allocation5 + $0x70] sm:$0xff]  ;;  %v285_v41 = vld [vmem:[#allocation5 + $0x78] sm:$0xff]  ;;  %v725_v42 = vpack.c.bf16 %v377_v38, %v376_v37  ;;  %v378_v43 = vld [vmem:[#allocation7 + $0x60] sm:$0xff] }
  0x73   : > { %714 = vmatpush3.bf16.msra.mxu1 %v713_v18  ;;  %v379_v44 = vld [vmem:[#allocation7 + $0x68] sm:$0xff]  ;;  %v707_v45 = vpack.c.bf16 %v285_v41, %v284_v40  ;;  %v269_v47 = vld [vmem:[%s1177_s17] sm:$0xff]  ;;  %p900_p12 = por %p899_p9, %p898_p7 }
  0x74   : > { %693 = vmatpush3.bf16.msra.mxu0 %v692_v14  ;;  %715 = vmatprep.subr.bf16.mxu1 %v968_v0  ;;  %v728_v46 = vpack.c.bf16 %v379_v44, %v378_v43  ;;  %v380_v48 = vld [vmem:[#allocation7 + $0x70] sm:$0xff]  ;;  %v381_v49 = vld [vmem:[#allocation7 + $0x78] sm:$0xff] }
  0x75   : > { %694 = vmatprep.subr.bf16.mxu0 %v968_v0  ;;  %v731_v50 = vpack.c.bf16 %v381_v49, %v380_v48  ;;  %v575_v51 = vld [vmem:[%s1262_s2] ss:$0 sm:$0xff]  ;;  %p901_p2 = pnand %p900_p12, %p894_p3 }
  0x76   : > { %v576_v57 = vld [vmem:[%s1264_s4] ss:$0 sm:$0xff] }
  0x77   : > { %717 = vmatpush3.bf16.msra.mxu1 %v716_v24 }
  0x78   : > { %696 = vmatpush3.bf16.msra.mxu0 %v695_v21  ;;  %718 = vmatprep.subr.bf16.mxu1 %v968_v0 }
  0x79   : > { %697 = vmatprep.subr.bf16.mxu0 %v968_v0 }
  0x7b   : > { %720 = vmatpush3.bf16.msra.mxu1 %v719_v30 }
  0x7c   : > { %699 = vmatpush3.bf16.msra.mxu0 %v698_v27  ;;  %721 = vmatprep.subr.bf16.mxu1 %v968_v0 }
  0x7d   : > { %700 = vmatprep.subr.bf16.mxu0 %v968_v0 }
  0x7f   : > { %723 = vmatpush3.bf16.msra.mxu1 %v722_v36 }
  0x80   : > { %702 = vmatpush3.bf16.msra.mxu0 %v701_v33  ;;  %724 = vmatprep.subr.bf16.mxu1 %v968_v0 }
  0x81   : > { %703 = vmatprep.subr.bf16.mxu0 %v968_v0 }
  0x83   : > { %726 = vmatpush3.bf16.msra.mxu1 %v725_v42 }
  0x84   : > { %705 = vmatpush3.bf16.msra.mxu0 %v704_v39  ;;  %727 = vmatprep.subr.bf16.mxu1 %v968_v0 }
  0x85   : > { %706 = vmatprep.subr.bf16.mxu0 %v968_v0 }
  0x87   : > { %729 = vmatpush3.bf16.msra.mxu1 %v728_v46 }
  0x88   : > { %708 = vmatpush3.bf16.msra.mxu0 %v707_v45  ;;  %730 = vmatprep.subr.bf16.mxu1 %v968_v0 }
  0x8b   : > { %648 = vmatmul.mubr.f32.vlgmr.msra.gmra.mrb[0].mxu0 %v269_v47  ;;  %732 = vmatpush3.bf16.msra.mxu1 %v731_v50 }
 0x15e   : > { %v359_v52 = vpop.f32.mrb[0].mxu0 }
 0x15f   : > { %v360_v53 = vadd.f32 %v575_v51, %v359_v52  ;;  %v649_v54 = vpop.f32.mrb[1].mxu0 }
 0x161   : > { %v364_v55 = vmul.f32 0.01, %v360_v53  ;;  %vm363_vm1 = vcmp.gt.f32.partialorder %v360_v53, 0.0 }
 0x163   : > { %v365_v56 = vsel %vm363_vm1, %v360_v53, %v364_v55 }
 0x164   : > { %683 = vmatmul.mubr.f32.vlgmr.msra.gmra.mrb[0].mxu1 %v365_v56 }
 0x237   : > { %v455_v58 = vpop.f32.mrb[0].mxu1 }
 0x238   : > { %v456_v59 = vadd.f32 %v576_v57, %v455_v58  ;;  %v684_v60 = vpop.f32.mrb[1].mxu1 }
 0x23a   : > { %459 = vst [vmem:[%s268_s28] sm:$0xff] %v456_v59 }
 0x23b   : > { %904 = shalt.err (!%p901_p2)
}
 0x23c   : > { %s905_s12 = scalar_lea.hbm %s1216_s15, 128  ;;  %s909_s26 = scalar_lea.hbm %s1265_s5, 256 }
 0x23d   : > { %p906_p13 = scmp.ne.s32.totalorder %s1216_s15, %s905_s12  ;;  %p910_p4 = scmp.lt.u32.totalorder %s1216_s15, %s1265_s5 }
 0x23e   : > { %p911_p5 = scmp.lt.u32.totalorder %s909_s26, %s905_s12  ;;  %p913_p11 = scmp.lt.u32.totalorder %s905_s12, %s1216_s15 }
 0x23f   : > { %p907_p6 = pnand %p906_p13, %p1279_p0 }
 0x240   : > { %p912_p8 = por %p911_p5, %p910_p4 }
 0x241   : > { %p908_p10 = pneg %p907_p6 }
 0x242   : > { %p914_p1 = por %p913_p11, %p912_p8 }
 0x244   : > { %p915_p3 = pnand %p914_p1, %p908_p10 }
 0x246   : > { %918 = shalt.err (!%p915_p3)
}
 0x247   : > { %743 = dma.vmem_to_hbm [thread:$0]  (%p1279_p0), %s1218_s7, 128, %s1216_s15, %s461_s16  }
 0x248 PF: > { %s486_s11 = sand.u32 1, %s949_s18   ;;  %p1280_p7 = scmp.ne.s32.totalorder %s1270_s25, 0 }
 0x249   : > { %p1281_p9 = scmp.ge.s32.totalorder %s961_s21, 2  ;;  %s487_s28 = scalar_lea.sflag [#allocation4], %s486_s11 }
 0x24b   : > { %p757_p12 = pnand %p1281_p9, %p1280_p7 }
 0x24d   : > { %944 = dma.done.wait (!%p757_p12), %s487_s28, 128  }
 0x24e   : > { %946 = vsyncadd (!%p757_p12), %s487_s28, 4294967168  ;;  %p19_p2 = scmp.ge.s32.totalorder %s1112_s14, 4   ;;  %s1282_s18 = smov %s953_s19 }
 0x24f   : > { %s1283_s19 = smov %s957_s20  ;;  %s1284_s20 = smov %s1128_s27 }
 0x250   : > { %s1285_s21 = smov %s1112_s14  ;;  %21 = sbr.rel (!%p19_p2) target bundleno = 6 (0x6), region = 93 }
 0x257   :  { %492 = vsyncpa [#allocation3], 1 }
 0x258   :  { %494 = vsyncpa [#allocation3 + $0x1], 1 }
 0x259   :  { %495 = vsyncpa [#allocation6], 1 }
 0x25a   :  { %496 = vsyncpa [#allocation4], 1 }
 0x25b   :  { %498 = vsyncpa [#allocation4 + $0x1], 1 }

</bundles_post_ra>
